<compile_context>
chip_gen: v7x
topology: tpu7x:2x2x1
jax: 0.10.0
libtpu: 0.0.40
codegen_flags: <defaults>
</compile_context>

<pallas_src>
import functools
import math

import jax
import jax.numpy as jnp
from jax.experimental import pallas as pl
from jax.experimental.pallas import tpu as pltpu


def _self_attention_layer_kernel(head_num, head_size, out_dim, ln_eps,
                                 x_ref, mask_ref,
                                 wqkv_ref, bqkv_ref, wo_ref, bo_ref,
                                 gamma_ref, beta_ref,
                                 o_ref):
    # Per-batch tile: squeeze the leading batch-of-1 dim -> 2-D activations.
    x = x_ref[0].astype(jnp.float32)                        # (S, Din)
    neg_mask = mask_ref[0].astype(jnp.float32) * (-1000000000000000.0)  # (1, S)

    wqkv = wqkv_ref[...].astype(jnp.float32)                # (Din, 3*Dout) (Q pre-scaled)
    bqkv = bqkv_ref[...].astype(jnp.float32)                # (1, 3*Dout)
    wo = wo_ref[...].astype(jnp.float32)                    # (Dout, Din)
    bo = bo_ref[...].astype(jnp.float32)                    # (1, Din)
    gamma = gamma_ref[...].astype(jnp.float32)              # (1, Din)
    beta = beta_ref[...].astype(jnp.float32)                # (1, Din)

    # ---- fused Q/K/V projection: single MXU matmul ----
    qkv = jnp.dot(x, wqkv, preferred_element_type=jnp.float32) + bqkv  # (S, 3*Dout)
    q = qkv[:, :out_dim]                # already scaled by 1/sqrt(head_size)
    k = qkv[:, out_dim:2 * out_dim]
    v = qkv[:, 2 * out_dim:]

    # ---- per-head attention; accumulate straight into the output projection ----
    ff = jnp.zeros((x.shape[0], wo.shape[1]), jnp.float32)  # (S, Din)
    for h in range(head_num):
        lo = h * head_size
        hi = lo + head_size
        qh = q[:, lo:hi]                                    # (S, Dh)
        kh = k[:, lo:hi]
        vh = v[:, lo:hi]

        # scores: contract the head dim of q and k (no explicit transpose)
        score = jax.lax.dot_general(qh, kh, (((1,), (1,)), ((), ())),
                                    preferred_element_type=jnp.float32)  # (S, S)
        score = score + neg_mask
        score = score - jnp.max(score, axis=-1, keepdims=True)
        p = jnp.exp(score)
        p = p * pl.reciprocal(jnp.sum(p, axis=-1, keepdims=True), approx=True)

        ctx_h = jnp.dot(p, vh, preferred_element_type=jnp.float32)       # (S, Dh)
        # partial output projection for this head (static lane slice of wo)
        ff = ff + jnp.dot(ctx_h, wo[lo:hi, :], preferred_element_type=jnp.float32)

    ff = ff + bo
    res = ff + x                                            # residual

    # ---- LayerNorm ----
    mean = jnp.mean(res, axis=-1, keepdims=True)
    cen = res - mean
    var = jnp.mean(cen * cen, axis=-1, keepdims=True)
    out = cen * jax.lax.rsqrt(var + ln_eps) * gamma + beta

    o_ref[...] = out[None].astype(o_ref.dtype)


def self_attention_layer(x, mask, params, head_num):
    """x: (B, S, in_dim) f32; mask: (B, S) f32 (1.0 = masked key position)."""
    B, S, in_dim = x.shape
    out_dim = params['wq'].shape[1]
    head_size = out_dim // head_num
    ln_eps = 1e-5
    scale = 1.0 / math.sqrt(head_size)

    # Fuse Q/K/V into one weight; fold the 1/sqrt(head_size) scale into Q.
    wqkv = jnp.concatenate(
        [params['wq'] * scale, params['wk'], params['wv']], axis=1)       # (Din, 3*Dout)
    bqkv = jnp.concatenate(
        [params['bq'] * scale, params['bk'], params['bv']], axis=0).reshape(1, -1)
    wo = params['wo']                                                     # (Dout, Din)
    bo = params['bo'].reshape(1, -1)
    gamma = params['gamma'].reshape(1, -1)
    beta = params['beta'].reshape(1, -1)
    mask3 = mask.reshape(B, 1, S)

    kernel = functools.partial(
        _self_attention_layer_kernel, head_num, head_size, out_dim, ln_eps)

    return pl.pallas_call(
        kernel,
        out_shape=jax.ShapeDtypeStruct((B, S, in_dim), x.dtype),
        grid=(B,),
        in_specs=[
            pl.BlockSpec((1, S, in_dim), lambda b: (b, 0, 0)),   # x
            pl.BlockSpec((1, 1, S), lambda b: (b, 0, 0)),        # mask
            pl.BlockSpec(wqkv.shape, lambda b: (0, 0)),          # fused QKV weight
            pl.BlockSpec(bqkv.shape, lambda b: (0, 0)),          # fused QKV bias
            pl.BlockSpec(wo.shape, lambda b: (0, 0)),            # output proj weight
            pl.BlockSpec(bo.shape, lambda b: (0, 0)),            # output proj bias
            pl.BlockSpec(gamma.shape, lambda b: (0, 0)),         # LN gamma
            pl.BlockSpec(beta.shape, lambda b: (0, 0)),          # LN beta
        ],
        out_specs=pl.BlockSpec((1, S, in_dim), lambda b: (b, 0, 0)),
        compiler_params=pltpu.CompilerParams(
            dimension_semantics=("parallel",)),
    )(x, mask3, wqkv, bqkv, wo, bo, gamma, beta)


def _reference(x, mask, params, head_num):
    """Pure-JAX reference mirroring the PyTorch module (eval mode)."""
    B, S, in_dim = x.shape
    out_dim = params['wq'].shape[1]
    head_size = out_dim // head_num

    q = x @ params['wq'] + params['bq']
    k = x @ params['wk'] + params['bk']
    v = x @ params['wv'] + params['bv']

    def split(t):
        return t.reshape(B, S, head_num, head_size).transpose(0, 2, 1, 3)

    q, k, v = split(q), split(k), split(v)
    score = jnp.einsum('bhqd,bhkd->bhqk', q, k) / math.sqrt(head_size)
    score = score + mask[:, None, None, :] * (-1000000000000000.0)
    att = jax.nn.softmax(score, axis=-1)
    ctx = jnp.einsum('bhqk,bhkd->bhqd', att, v)
    ctx = ctx.transpose(0, 2, 1, 3).reshape(B, S, out_dim)

    ff = ctx @ params['wo'] + params['bo']
    res = ff + x
    mean = jnp.mean(res, axis=-1, keepdims=True)
    var = jnp.mean((res - mean) ** 2, axis=-1, keepdims=True)
    return (res - mean) / jnp.sqrt(var + 1e-5) * params['gamma'] + params['beta']


if __name__ == "__main__":
    B, S, in_dim, out_dim, head_num = 2, 8, 32, 32, 4

    key = jax.random.PRNGKey(0)
    keys = jax.random.split(key, 10)

    # deterministic synthetic parameters (shapes match the nn.Module's __init__)
    params = {
        'wq': jax.random.normal(keys[0], (in_dim, out_dim), jnp.float32) * 0.1,
        'bq': jax.random.normal(keys[1], (out_dim,), jnp.float32) * 0.1,
        'wk': jax.random.normal(keys[2], (in_dim, out_dim), jnp.float32) * 0.1,
        'bk': jax.random.normal(keys[3], (out_dim,), jnp.float32) * 0.1,
        'wv': jax.random.normal(keys[4], (in_dim, out_dim), jnp.float32) * 0.1,
        'bv': jax.random.normal(keys[5], (out_dim,), jnp.float32) * 0.1,
        'wo': jax.random.normal(keys[6], (out_dim, in_dim), jnp.float32) * 0.1,
        'bo': jax.random.normal(keys[7], (in_dim,), jnp.float32) * 0.1,
        'gamma': jnp.ones((in_dim,), jnp.float32),
        'beta': jnp.zeros((in_dim,), jnp.float32),
    }

    x = jax.random.normal(keys[8], (B, S, in_dim), jnp.float32)
    # mask: 1.0 = padded / masked-out key position (matches the PyTorch usage)
    mask = jnp.zeros((B, S), jnp.float32).at[1, S - 2:].set(1.0)

    out = self_attention_layer(x, mask, params, head_num)
    out = jax.block_until_ready(out)

    ref = _reference(x, mask, params, head_num)
    assert out.shape == (B, S, in_dim)
    assert jnp.allclose(out, ref, atol=1e-2, rtol=1e-2), "mismatch vs reference"

    print("KERNEL_OK")
</pallas_src>

<mosaic_0001>
module attributes {stable_mosaic.version = 11 : i64} {
  func.func @_self_attention_layer_kernel(%arg0: i32, %arg1: memref<1x8x32xf32, #tpu.memory_space<vmem>>, %arg2: memref<1x1x8xf32, #tpu.memory_space<vmem>>, %arg3: memref<32x96xf32, #tpu.memory_space<vmem>>, %arg4: memref<1x96xf32, #tpu.memory_space<vmem>>, %arg5: memref<32x32xf32, #tpu.memory_space<vmem>>, %arg6: memref<1x32xf32, #tpu.memory_space<vmem>>, %arg7: memref<1x32xf32, #tpu.memory_space<vmem>>, %arg8: memref<1x32xf32, #tpu.memory_space<vmem>>, %arg9: memref<1x8x32xf32, #tpu.memory_space<vmem>>) attributes {dimension_semantics = [#tpu.dimension_semantics<parallel>], iteration_bounds = array<i64: 2>, scalar_prefetch = 0 : i64, scratch_operands = 0 : i64, tpu.core_type = #tpu.core_type<tc>, window_params = [{transform_indices = @transform_0, window_bounds = array<i64: 1, 8, 32>}, {transform_indices = @transform_1, window_bounds = array<i64: 1, 1, 8>}, {pipeline_mode = #tpu.pipeline_mode<synchronous>, transform_indices = @transform_2, window_bounds = array<i64: 32, 96>}, {pipeline_mode = #tpu.pipeline_mode<synchronous>, transform_indices = @transform_3, window_bounds = array<i64: 1, 96>}, {pipeline_mode = #tpu.pipeline_mode<synchronous>, transform_indices = @transform_4, window_bounds = array<i64: 32, 32>}, {pipeline_mode = #tpu.pipeline_mode<synchronous>, transform_indices = @transform_5, window_bounds = array<i64: 1, 32>}, {pipeline_mode = #tpu.pipeline_mode<synchronous>, transform_indices = @transform_6, window_bounds = array<i64: 1, 32>}, {pipeline_mode = #tpu.pipeline_mode<synchronous>, transform_indices = @transform_7, window_bounds = array<i64: 1, 32>}, {transform_indices = @transform_8, window_bounds = array<i64: 1, 8, 32>}]} {
    %c0 = arith.constant 0 : index
    %c0_0 = arith.constant 0 : index
    %c0_1 = arith.constant 0 : index
    %0 = vector.load %arg1[%c0, %c0_0, %c0_1] : memref<1x8x32xf32, #tpu.memory_space<vmem>>, vector<1x8x32xf32>
    %1 = vector.shape_cast %0 : vector<1x8x32xf32> to vector<8x32xf32>
    %c0_2 = arith.constant 0 : index
    %c0_3 = arith.constant 0 : index
    %c0_4 = arith.constant 0 : index
    %2 = vector.load %arg2[%c0_2, %c0_3, %c0_4] : memref<1x1x8xf32, #tpu.memory_space<vmem>>, vector<1x1x8xf32>
    %3 = vector.shape_cast %2 : vector<1x1x8xf32> to vector<1x8xf32>
    %cst = arith.constant -9.99999986E+14 : f32
    %4 = vector.broadcast %cst : f32 to vector<1x8xf32>
    %5 = arith.mulf %3, %4 : vector<1x8xf32>
    %c0_5 = arith.constant 0 : index
    %c0_6 = arith.constant 0 : index
    %6 = vector.load %arg3[%c0_5, %c0_6] : memref<32x96xf32, #tpu.memory_space<vmem>>, vector<32x96xf32>
    %c0_7 = arith.constant 0 : index
    %c0_8 = arith.constant 0 : index
    %7 = vector.load %arg4[%c0_7, %c0_8] : memref<1x96xf32, #tpu.memory_space<vmem>>, vector<1x96xf32>
    %c0_9 = arith.constant 0 : index
    %c0_10 = arith.constant 0 : index
    %8 = vector.load %arg5[%c0_9, %c0_10] : memref<32x32xf32, #tpu.memory_space<vmem>>, vector<32x32xf32>
    %c0_11 = arith.constant 0 : index
    %c0_12 = arith.constant 0 : index
    %9 = vector.load %arg6[%c0_11, %c0_12] : memref<1x32xf32, #tpu.memory_space<vmem>>, vector<1x32xf32>
    %c0_13 = arith.constant 0 : index
    %c0_14 = arith.constant 0 : index
    %10 = vector.load %arg7[%c0_13, %c0_14] : memref<1x32xf32, #tpu.memory_space<vmem>>, vector<1x32xf32>
    %c0_15 = arith.constant 0 : index
    %c0_16 = arith.constant 0 : index
    %11 = vector.load %arg8[%c0_15, %c0_16] : memref<1x32xf32, #tpu.memory_space<vmem>>, vector<1x32xf32>
    %cst_17 = arith.constant dense<0.000000e+00> : vector<8x96xf32>
    %12 = tpu.matmul %1, %6, %cst_17 {dimension_numbers = #tpu.dot_dimension_numbers<[1], [0], [0], [1], [0, 0, 1, 1], [], []>} : vector<8x32xf32>, vector<32x96xf32>, vector<8x96xf32> -> vector<8x96xf32>
    %13 = vector.broadcast %7 : vector<1x96xf32> to vector<8x96xf32>
    %14 = arith.addf %12, %13 : vector<8x96xf32>
    %15 = vector.extract_strided_slice %14 {offsets = [0, 0], sizes = [8, 32], strides = [1, 1]} : vector<8x96xf32> to vector<8x32xf32>
    %16 = vector.extract_strided_slice %14 {offsets = [0, 32], sizes = [8, 32], strides = [1, 1]} : vector<8x96xf32> to vector<8x32xf32>
    %17 = vector.extract_strided_slice %14 {offsets = [0, 64], sizes = [8, 32], strides = [1, 1]} : vector<8x96xf32> to vector<8x32xf32>
    %cst_18 = arith.constant 0.000000e+00 : f32
    %18 = vector.broadcast %cst_18 : f32 to vector<8x32xf32>
    %19 = vector.extract_strided_slice %15 {offsets = [0, 0], sizes = [8, 8], strides = [1, 1]} : vector<8x32xf32> to vector<8x8xf32>
    %20 = vector.extract_strided_slice %16 {offsets = [0, 0], sizes = [8, 8], strides = [1, 1]} : vector<8x32xf32> to vector<8x8xf32>
    %21 = vector.extract_strided_slice %17 {offsets = [0, 0], sizes = [8, 8], strides = [1, 1]} : vector<8x32xf32> to vector<8x8xf32>
    %cst_19 = arith.constant dense<0.000000e+00> : vector<8x8xf32>
    %22 = tpu.matmul %19, %20, %cst_19 {dimension_numbers = #tpu.dot_dimension_numbers<[1], [1], [0], [0], [0, 0, 1, 0], [], []>} : vector<8x8xf32>, vector<8x8xf32>, vector<8x8xf32> -> vector<8x8xf32>
    %23 = vector.broadcast %5 : vector<1x8xf32> to vector<8x8xf32>
    %24 = arith.addf %22, %23 : vector<8x8xf32>
    %cst_20 = arith.constant dense<0xFF800000> : vector<8xf32>
    %25 = vector.multi_reduction <maximumf>, %24, %cst_20 [1] : vector<8x8xf32> to vector<8xf32>
    %26 = vector.shape_cast %25 : vector<8xf32> to vector<8x1xf32>
    %27 = vector.broadcast %26 : vector<8x1xf32> to vector<8x8xf32>
    %28 = arith.subf %24, %27 : vector<8x8xf32>
    %29 = math.exp %28 : vector<8x8xf32>
    %cst_21 = arith.constant dense<0.000000e+00> : vector<8xf32>
    %30 = vector.multi_reduction <add>, %29, %cst_21 [1] : vector<8x8xf32> to vector<8xf32>
    %31 = vector.shape_cast %30 : vector<8xf32> to vector<8x1xf32>
    %32 = tpu.reciprocal %31 {approx = true} : vector<8x1xf32> -> vector<8x1xf32>
    %33 = vector.broadcast %32 : vector<8x1xf32> to vector<8x8xf32>
    %34 = arith.mulf %29, %33 : vector<8x8xf32>
    %cst_22 = arith.constant dense<0.000000e+00> : vector<8x8xf32>
    %35 = tpu.matmul %34, %21, %cst_22 {dimension_numbers = #tpu.dot_dimension_numbers<[1], [0], [0], [1], [0, 0, 1, 1], [], []>} : vector<8x8xf32>, vector<8x8xf32>, vector<8x8xf32> -> vector<8x8xf32>
    %36 = vector.extract_strided_slice %8 {offsets = [0, 0], sizes = [8, 32], strides = [1, 1]} : vector<32x32xf32> to vector<8x32xf32>
    %cst_23 = arith.constant dense<0.000000e+00> : vector<8x32xf32>
    %37 = tpu.matmul %35, %36, %cst_23 {dimension_numbers = #tpu.dot_dimension_numbers<[1], [0], [0], [1], [0, 0, 1, 1], [], []>} : vector<8x8xf32>, vector<8x32xf32>, vector<8x32xf32> -> vector<8x32xf32>
    %38 = arith.addf %18, %37 : vector<8x32xf32>
    %39 = vector.extract_strided_slice %15 {offsets = [0, 8], sizes = [8, 8], strides = [1, 1]} : vector<8x32xf32> to vector<8x8xf32>
    %40 = vector.extract_strided_slice %16 {offsets = [0, 8], sizes = [8, 8], strides = [1, 1]} : vector<8x32xf32> to vector<8x8xf32>
    %41 = vector.extract_strided_slice %17 {offsets = [0, 8], sizes = [8, 8], strides = [1, 1]} : vector<8x32xf32> to vector<8x8xf32>
    %cst_24 = arith.constant dense<0.000000e+00> : vector<8x8xf32>
    %42 = tpu.matmul %39, %40, %cst_24 {dimension_numbers = #tpu.dot_dimension_numbers<[1], [1], [0], [0], [0, 0, 1, 0], [], []>} : vector<8x8xf32>, vector<8x8xf32>, vector<8x8xf32> -> vector<8x8xf32>
    %43 = vector.broadcast %5 : vector<1x8xf32> to vector<8x8xf32>
    %44 = arith.addf %42, %43 : vector<8x8xf32>
    %cst_25 = arith.constant dense<0xFF800000> : vector<8xf32>
    %45 = vector.multi_reduction <maximumf>, %44, %cst_25 [1] : vector<8x8xf32> to vector<8xf32>
    %46 = vector.shape_cast %45 : vector<8xf32> to vector<8x1xf32>
    %47 = vector.broadcast %46 : vector<8x1xf32> to vector<8x8xf32>
    %48 = arith.subf %44, %47 : vector<8x8xf32>
    %49 = math.exp %48 : vector<8x8xf32>
    %cst_26 = arith.constant dense<0.000000e+00> : vector<8xf32>
    %50 = vector.multi_reduction <add>, %49, %cst_26 [1] : vector<8x8xf32> to vector<8xf32>
    %51 = vector.shape_cast %50 : vector<8xf32> to vector<8x1xf32>
    %52 = tpu.reciprocal %51 {approx = true} : vector<8x1xf32> -> vector<8x1xf32>
    %53 = vector.broadcast %52 : vector<8x1xf32> to vector<8x8xf32>
    %54 = arith.mulf %49, %53 : vector<8x8xf32>
    %cst_27 = arith.constant dense<0.000000e+00> : vector<8x8xf32>
    %55 = tpu.matmul %54, %41, %cst_27 {dimension_numbers = #tpu.dot_dimension_numbers<[1], [0], [0], [1], [0, 0, 1, 1], [], []>} : vector<8x8xf32>, vector<8x8xf32>, vector<8x8xf32> -> vector<8x8xf32>
    %56 = vector.extract_strided_slice %8 {offsets = [8, 0], sizes = [8, 32], strides = [1, 1]} : vector<32x32xf32> to vector<8x32xf32>
    %cst_28 = arith.constant dense<0.000000e+00> : vector<8x32xf32>
    %57 = tpu.matmul %55, %56, %cst_28 {dimension_numbers = #tpu.dot_dimension_numbers<[1], [0], [0], [1], [0, 0, 1, 1], [], []>} : vector<8x8xf32>, vector<8x32xf32>, vector<8x32xf32> -> vector<8x32xf32>
    %58 = arith.addf %38, %57 : vector<8x32xf32>
    %59 = vector.extract_strided_slice %15 {offsets = [0, 16], sizes = [8, 8], strides = [1, 1]} : vector<8x32xf32> to vector<8x8xf32>
    %60 = vector.extract_strided_slice %16 {offsets = [0, 16], sizes = [8, 8], strides = [1, 1]} : vector<8x32xf32> to vector<8x8xf32>
    %61 = vector.extract_strided_slice %17 {offsets = [0, 16], sizes = [8, 8], strides = [1, 1]} : vector<8x32xf32> to vector<8x8xf32>
    %cst_29 = arith.constant dense<0.000000e+00> : vector<8x8xf32>
    %62 = tpu.matmul %59, %60, %cst_29 {dimension_numbers = #tpu.dot_dimension_numbers<[1], [1], [0], [0], [0, 0, 1, 0], [], []>} : vector<8x8xf32>, vector<8x8xf32>, vector<8x8xf32> -> vector<8x8xf32>
    %63 = vector.broadcast %5 : vector<1x8xf32> to vector<8x8xf32>
    %64 = arith.addf %62, %63 : vector<8x8xf32>
    %cst_30 = arith.constant dense<0xFF800000> : vector<8xf32>
    %65 = vector.multi_reduction <maximumf>, %64, %cst_30 [1] : vector<8x8xf32> to vector<8xf32>
    %66 = vector.shape_cast %65 : vector<8xf32> to vector<8x1xf32>
    %67 = vector.broadcast %66 : vector<8x1xf32> to vector<8x8xf32>
    %68 = arith.subf %64, %67 : vector<8x8xf32>
    %69 = math.exp %68 : vector<8x8xf32>
    %cst_31 = arith.constant dense<0.000000e+00> : vector<8xf32>
    %70 = vector.multi_reduction <add>, %69, %cst_31 [1] : vector<8x8xf32> to vector<8xf32>
    %71 = vector.shape_cast %70 : vector<8xf32> to vector<8x1xf32>
    %72 = tpu.reciprocal %71 {approx = true} : vector<8x1xf32> -> vector<8x1xf32>
    %73 = vector.broadcast %72 : vector<8x1xf32> to vector<8x8xf32>
    %74 = arith.mulf %69, %73 : vector<8x8xf32>
    %cst_32 = arith.constant dense<0.000000e+00> : vector<8x8xf32>
    %75 = tpu.matmul %74, %61, %cst_32 {dimension_numbers = #tpu.dot_dimension_numbers<[1], [0], [0], [1], [0, 0, 1, 1], [], []>} : vector<8x8xf32>, vector<8x8xf32>, vector<8x8xf32> -> vector<8x8xf32>
    %76 = vector.extract_strided_slice %8 {offsets = [16, 0], sizes = [8, 32], strides = [1, 1]} : vector<32x32xf32> to vector<8x32xf32>
    %cst_33 = arith.constant dense<0.000000e+00> : vector<8x32xf32>
    %77 = tpu.matmul %75, %76, %cst_33 {dimension_numbers = #tpu.dot_dimension_numbers<[1], [0], [0], [1], [0, 0, 1, 1], [], []>} : vector<8x8xf32>, vector<8x32xf32>, vector<8x32xf32> -> vector<8x32xf32>
    %78 = arith.addf %58, %77 : vector<8x32xf32>
    %79 = vector.extract_strided_slice %15 {offsets = [0, 24], sizes = [8, 8], strides = [1, 1]} : vector<8x32xf32> to vector<8x8xf32>
    %80 = vector.extract_strided_slice %16 {offsets = [0, 24], sizes = [8, 8], strides = [1, 1]} : vector<8x32xf32> to vector<8x8xf32>
    %81 = vector.extract_strided_slice %17 {offsets = [0, 24], sizes = [8, 8], strides = [1, 1]} : vector<8x32xf32> to vector<8x8xf32>
    %cst_34 = arith.constant dense<0.000000e+00> : vector<8x8xf32>
    %82 = tpu.matmul %79, %80, %cst_34 {dimension_numbers = #tpu.dot_dimension_numbers<[1], [1], [0], [0], [0, 0, 1, 0], [], []>} : vector<8x8xf32>, vector<8x8xf32>, vector<8x8xf32> -> vector<8x8xf32>
    %83 = vector.broadcast %5 : vector<1x8xf32> to vector<8x8xf32>
    %84 = arith.addf %82, %83 : vector<8x8xf32>
    %cst_35 = arith.constant dense<0xFF800000> : vector<8xf32>
    %85 = vector.multi_reduction <maximumf>, %84, %cst_35 [1] : vector<8x8xf32> to vector<8xf32>
    %86 = vector.shape_cast %85 : vector<8xf32> to vector<8x1xf32>
    %87 = vector.broadcast %86 : vector<8x1xf32> to vector<8x8xf32>
    %88 = arith.subf %84, %87 : vector<8x8xf32>
    %89 = math.exp %88 : vector<8x8xf32>
    %cst_36 = arith.constant dense<0.000000e+00> : vector<8xf32>
    %90 = vector.multi_reduction <add>, %89, %cst_36 [1] : vector<8x8xf32> to vector<8xf32>
    %91 = vector.shape_cast %90 : vector<8xf32> to vector<8x1xf32>
    %92 = tpu.reciprocal %91 {approx = true} : vector<8x1xf32> -> vector<8x1xf32>
    %93 = vector.broadcast %92 : vector<8x1xf32> to vector<8x8xf32>
    %94 = arith.mulf %89, %93 : vector<8x8xf32>
    %cst_37 = arith.constant dense<0.000000e+00> : vector<8x8xf32>
    %95 = tpu.matmul %94, %81, %cst_37 {dimension_numbers = #tpu.dot_dimension_numbers<[1], [0], [0], [1], [0, 0, 1, 1], [], []>} : vector<8x8xf32>, vector<8x8xf32>, vector<8x8xf32> -> vector<8x8xf32>
    %96 = vector.extract_strided_slice %8 {offsets = [24, 0], sizes = [8, 32], strides = [1, 1]} : vector<32x32xf32> to vector<8x32xf32>
    %cst_38 = arith.constant dense<0.000000e+00> : vector<8x32xf32>
    %97 = tpu.matmul %95, %96, %cst_38 {dimension_numbers = #tpu.dot_dimension_numbers<[1], [0], [0], [1], [0, 0, 1, 1], [], []>} : vector<8x8xf32>, vector<8x32xf32>, vector<8x32xf32> -> vector<8x32xf32>
    %98 = arith.addf %78, %97 : vector<8x32xf32>
    %99 = vector.broadcast %9 : vector<1x32xf32> to vector<8x32xf32>
    %100 = arith.addf %98, %99 : vector<8x32xf32>
    %101 = arith.addf %100, %1 : vector<8x32xf32>
    %cst_39 = arith.constant dense<0.000000e+00> : vector<8xf32>
    %102 = vector.multi_reduction <add>, %101, %cst_39 [1] : vector<8x32xf32> to vector<8xf32>
    %103 = vector.shape_cast %102 : vector<8xf32> to vector<8x1xf32>
    %cst_40 = arith.constant 3.200000e+01 : f32
    %104 = vector.broadcast %cst_40 : f32 to vector<8x1xf32>
    %105 = arith.divf %103, %104 : vector<8x1xf32>
    %106 = vector.broadcast %105 : vector<8x1xf32> to vector<8x32xf32>
    %107 = arith.subf %101, %106 : vector<8x32xf32>
    %108 = arith.mulf %107, %107 : vector<8x32xf32>
    %cst_41 = arith.constant dense<0.000000e+00> : vector<8xf32>
    %109 = vector.multi_reduction <add>, %108, %cst_41 [1] : vector<8x32xf32> to vector<8xf32>
    %110 = vector.shape_cast %109 : vector<8xf32> to vector<8x1xf32>
    %cst_42 = arith.constant 3.200000e+01 : f32
    %111 = vector.broadcast %cst_42 : f32 to vector<8x1xf32>
    %112 = arith.divf %110, %111 : vector<8x1xf32>
    %cst_43 = arith.constant 9.99999974E-6 : f32
    %113 = vector.broadcast %cst_43 : f32 to vector<8x1xf32>
    %114 = arith.addf %112, %113 : vector<8x1xf32>
    %115 = math.rsqrt %114 : vector<8x1xf32>
    %116 = vector.broadcast %115 : vector<8x1xf32> to vector<8x32xf32>
    %117 = arith.mulf %107, %116 : vector<8x32xf32>
    %118 = vector.broadcast %10 : vector<1x32xf32> to vector<8x32xf32>
    %119 = arith.mulf %117, %118 : vector<8x32xf32>
    %120 = vector.broadcast %11 : vector<1x32xf32> to vector<8x32xf32>
    %121 = arith.addf %119, %120 : vector<8x32xf32>
    %122 = vector.shape_cast %121 : vector<8x32xf32> to vector<1x8x32xf32>
    %c0_44 = arith.constant 0 : index
    %c0_45 = arith.constant 0 : index
    %c0_46 = arith.constant 0 : index
    %123 = vector.load %arg9[%c0_44, %c0_45, %c0_46] : memref<1x8x32xf32, #tpu.memory_space<vmem>>, vector<1x8x32xf32>
    tpu.vector_store %arg9[%c0_44, %c0_45, %c0_46], %122 {strides = array<i32>} : memref<1x8x32xf32, #tpu.memory_space<vmem>>, vector<1x8x32xf32>,
    return
  }
  func.func @transform_0(%arg0: i32) -> (i32, i32, i32) {
    %c0_i32 = arith.constant 0 : i32
    %c0_i32_0 = arith.constant 0 : i32
    %c0_i32_1 = arith.constant 0 : i32
    return %arg0, %c0_i32, %c0_i32_0 : i32, i32, i32
  }
  func.func @transform_1(%arg0: i32) -> (i32, i32, i32) {
    %c0_i32 = arith.constant 0 : i32
    %c0_i32_0 = arith.constant 0 : i32
    %c0_i32_1 = arith.constant 0 : i32
    return %arg0, %c0_i32, %c0_i32_0 : i32, i32, i32
  }
  func.func @transform_2(%arg0: i32) -> (i32, i32) {
    %c0_i32 = arith.constant 0 : i32
    %c0_i32_0 = arith.constant 0 : i32
    %c0_i32_1 = arith.constant 0 : i32
    return %c0_i32, %c0_i32_0 : i32, i32
  }
  func.func @transform_3(%arg0: i32) -> (i32, i32) {
    %c0_i32 = arith.constant 0 : i32
    %c0_i32_0 = arith.constant 0 : i32
    %c0_i32_1 = arith.constant 0 : i32
    return %c0_i32, %c0_i32_0 : i32, i32
  }
  func.func @transform_4(%arg0: i32) -> (i32, i32) {
    %c0_i32 = arith.constant 0 : i32
    %c0_i32_0 = arith.constant 0 : i32
    %c0_i32_1 = arith.constant 0 : i32
    return %c0_i32, %c0_i32_0 : i32, i32
  }
  func.func @transform_5(%arg0: i32) -> (i32, i32) {
    %c0_i32 = arith.constant 0 : i32
    %c0_i32_0 = arith.constant 0 : i32
    %c0_i32_1 = arith.constant 0 : i32
    return %c0_i32, %c0_i32_0 : i32, i32
  }
  func.func @transform_6(%arg0: i32) -> (i32, i32) {
    %c0_i32 = arith.constant 0 : i32
    %c0_i32_0 = arith.constant 0 : i32
    %c0_i32_1 = arith.constant 0 : i32
    return %c0_i32, %c0_i32_0 : i32, i32
  }
  func.func @transform_7(%arg0: i32) -> (i32, i32) {
    %c0_i32 = arith.constant 0 : i32
    %c0_i32_0 = arith.constant 0 : i32
    %c0_i32_1 = arith.constant 0 : i32
    return %c0_i32, %c0_i32_0 : i32, i32
  }
  func.func @transform_8(%arg0: i32) -> (i32, i32, i32) {
    %c0_i32 = arith.constant 0 : i32
    %c0_i32_0 = arith.constant 0 : i32
    %c0_i32_1 = arith.constant 0 : i32
    return %arg0, %c0_i32, %c0_i32_0 : i32, i32, i32
  }
}

</mosaic_0001>

<bundles_post_ra>
// kernel: tpu_custom_call.1
= control target key start
LH: loop header
LB: loop body
LE: loop exit
PB: predicated region body
PF: predicated region fallthrough
CT: control target
= control target key end

     0   :  { %13 = vsyncpa [#allocation3], 0  ;;  %s2375_s0 = inlined_call_operand.hbm [shape: f32[2,8,32], index: 0, kind: input, shape index: {}]   ;;  %s2376_s1 = inlined_call_operand.vmem [shape: f32[2,1,8], index: 1, kind: input, shape index: {}]   ;;  %s2377_s2 = inlined_call_operand.hbm [shape: f32[32,96], index: 2, kind: input, shape index: {}]   ;;  %s2378_s3 = inlined_call_operand.vmem [shape: f32[1,96], index: 3, kind: input, shape index: {}]   ;;  %s2379_s4 = inlined_call_operand.hbm [shape: f32[32,32], index: 4, kind: input, shape index: {}]   ;;  %s2380_s5 = inlined_call_operand.vmem [shape: f32[1,32], index: 5, kind: input, shape index: {}]   ;;  %s2381_s6 = inlined_call_operand.vmem [shape: f32[1,32], index: 6, kind: input, shape index: {}]   ;;  %s2382_s7 = inlined_call_operand.vmem [shape: f32[1,32], index: 7, kind: input, shape index: {}]   ;;  %s2383_s8 = inlined_call_operand.hbm [shape: f32[2,8,32], index: 8, kind: output, shape index: {}]  }
   0x1   :  { %15 = vsyncpa [#allocation3 + $0x1], 0 }
   0x2   :  { %16 = vsyncpa [#allocation6], 0 }
   0x3   :  { %17 = vsyncpa [#allocation4], 0 }
   0x4   :  { %19 = vsyncpa [#allocation4 + $0x1], 0  ;;  %s2035_s27 = smov 0   ;;  %s2037_s28 = smov 0  }
   0x5   :  { %s2039_s29 = smov 0   ;;  %s2041_s30 = smov 0  }
   0x6 LB: > { %s2056_s9 = sadd.s32 4294967295, %s1968_s30   ;;  %s1568_s10 = sadd.s32 4294967294, %s1968_s30   ;;  %s1968_s30 = sphi %s2041_s30, %s2403_s30   ;;  %s1964_s29 = sphi %s2039_s29, %s2402_s29   ;;  %s1960_s28 = sphi %s2037_s28, %s2401_s28   ;;  %s1956_s27 = sphi %s2035_s27, %s2400_s27  }
   0x7   : > { %p45_p0 = scmp.ne.s32.totalorder %s1960_s28, %s1956_s27  ;;  %p2384_p1 = scmp.eq.s32.totalorder %s2056_s9, 0 }
   0x8   : > { %p227_p3 = scmp.eq.s32.totalorder %s1568_s10, 1  ;;  %p1569_p5 = scmp.ge.s32.totalorder %s1968_s30, 1 }
   0x9   : > { %p2065_p4 = por %p2384_p1, %p45_p0  ;;  %p234_p7 = scmp.lt.s32.totalorder %s1968_s30, 3 }
   0xa   : > { %p2070_p6 = por %p227_p3, %p45_p0  ;;  %s1970_s14 = smov [#allocation5]  }
   0xb   : > { %s2387_s11 = scalar_select %p2065_p4, 1, 0 }
   0xc   : > { %s2388_s12 = scalar_select %p2070_p6, 1, 0 }
   0xd   : > { %p2075_p8 = pnand %p1569_p5, %p234_p7  ;;  %s246_s15 = sshll.u32 %s1970_s14, 4  ;;  %s2079_s15 = int_to_ptr.vmem [resolvable:$true] %s246_s15 }
   0xe   : > { %s1971_s17 = smov [#allocation7]   ;;  %s1812_s21 = scalar_lea.hbm %s2377_s2, 512 }
   0xf   : > { %p1723_p9 = pneg %p2075_p8  ;;  %s262_s18 = sshll.u32 %s1971_s17, 4  ;;  %s2090_s18 = int_to_ptr.vmem [resolvable:$true] %s262_s18 }
  0x10   : > { %p1813_p12 = scmp.ne.s32.totalorder %s2377_s2, %s1812_s21  ;;  %p1819_p5 = scmp.lt.u32.totalorder %s1812_s21, %s2377_s2 }
  0x11   : > { %p2086_p11 = pnand %p1723_p9, %p2384_p1 }
  0x13   : > { %p1814_p13 = pneg %p2086_p11 }
  0x15   : > { %p1815_p0 = pnand %p1814_p13, %p1813_p12 }
  0x17   : > { %p1816_p3 = pneg %p1815_p0 }
  0x19   : > { %p1821_p7 = pnand %p1819_p5, %p1816_p3 }
  0x1b   : > { %1824 = shalt.err (!%p1821_p7)
}
  0x1c   : > { %s1825_s26 = scalar_lea.vmem %s2079_s15, 512  ;;  %p1833_p2 = scmp.lt.s32.totalorder %s2079_s15, %s2079_s15 }
  0x1d   : > { %p1826_p9 = scmp.ne.s32.totalorder %s2079_s15, %s1825_s26  ;;  %p1834_p12 = scmp.lt.s32.totalorder %s1825_s26, %s1825_s26 }
  0x1f   : > { %p1828_p10 = pnand %p1826_p9, %p1814_p13  ;;  %p1835_p0 = por %p1834_p12, %p1833_p2 }
  0x21   : > { %p1829_p1 = pneg %p1828_p10 }
  0x23   : > { %p1836_p6 = pnand %p1835_p0, %p1829_p1 }
  0x25   : > { %1839 = shalt.err (!%p1836_p6)
}
  0x26   : > { %s1972_s10 = smov 128   ;;  %s1973_s14 = smov 8  }
  0x27   : > { %1726 = dma.hbm_to_vmem [thread:$0]  (!%p2086_p11), %s2377_s2, 512, %s2079_s15, [#allocation6], %s1972_s10, %s1972_s10, %s1973_s14  }
  0x28   : > { %s1840_s22 = scalar_lea.hbm %s2379_s4, 512 }
  0x29   : > { %p1841_p2 = scmp.ne.s32.totalorder %s2379_s4, %s1840_s22  ;;  %p1847_p10 = scmp.lt.u32.totalorder %s1840_s22, %s2379_s4 }
  0x2b   : > { %p1843_p1 = pnand %p1841_p2, %p1814_p13 }
  0x2d   : > { %p1844_p6 = pneg %p1843_p1 }
  0x2f   : > { %p1849_p3 = pnand %p1847_p10, %p1844_p6 }
  0x31   : > { %1852 = shalt.err (!%p1849_p3)
}
  0x32   : > { %s1853_s15 = scalar_lea.vmem %s2090_s18, 512  ;;  %p1861_p12 = scmp.lt.s32.totalorder %s2090_s18, %s2090_s18 }
  0x33   : > { %p1854_p5 = scmp.ne.s32.totalorder %s2090_s18, %s1853_s15  ;;  %p1862_p0 = scmp.lt.s32.totalorder %s1853_s15, %s1853_s15 }
  0x35   : > { %p1856_p7 = pnand %p1854_p5, %p1814_p13  ;;  %p1863_p2 = por %p1862_p0, %p1861_p12 }
  0x37   : > { %p1857_p9 = pneg %p1856_p7 }
  0x39   : > { %p1864_p1 = pnand %p1863_p2, %p1857_p9 }
  0x3b   : > { %1867 = shalt.err (!%p1864_p1)
}
  0x3c   : > { %1729 = dma.hbm_to_vmem [thread:$0]  (!%p2086_p11), %s2379_s4, 512, %s2090_s18, [#allocation6], %s1972_s10, %s1972_s10, %s1973_s14  }
  0x3d   : > { %s2145_s20 = sadd.s32 1, %s1968_s30   ;;  %s32_s16 = sadd.s32 1, %s1964_s29 }
  0x3e   : > { %s29_s21 = ssub.s32 %s1968_s30, %s2145_s20  ;;  %p39_p13 = scmp.ne.s32.totalorder %s1964_s29, %s1960_s28 }
  0x3f   : > { %p30_p6 = scmp.eq.s32.totalorder %s29_s21, 0  ;;  %p40_p10 = scmp.eq.s32.totalorder %s1968_s30, 0 }
  0x40   : > { %p2391_p3 = scmp.eq.s32.totalorder %s2056_s9, 1  ;;  %p1740_p7 = scmp.lt.s32.totalorder %s1968_s30, 2 }
  0x41   : > { %s2161_s23 = scalar_select %p30_p6, %s1964_s29, %s32_s16  }
  0x42   : > { %p2155_p5 = por %p2391_p3, %p39_p13  ;;  %p41_p9 = por %p40_p10, %p39_p13 }
  0x43   : > { %s285_s24 = sand.u32 1, %s1964_s29   ;;  %s1574_s18 = sshll.u32 %s1968_s30, 7 }
  0x44   : > { %s2392_s22 = scalar_select %p2155_p5, 1, 0 }
  0x45   : > { %s1573_s25 = sshll.u32 %s285_s24, 3  ;;  %s2168_s26 = scalar_lea.hbm %s2375_s0, %s1574_s18 }
  0x46   : > { %s289_s15 = scalar_lea.vmem [#allocation2], %s1573_s25  ;;  %p2172_p11 = pnand %p1740_p7, %p41_p9 }
  0x47   : > { %s296_s17 = sshll.u32 %s289_s15, 4  ;;  %s286_s16 = scalar_lea.sflag [#allocation3], %s285_s24  ;;  %s2170_s17 = int_to_ptr.vmem [resolvable:$true] %s296_s17 }
  0x48   : > { %s1868_s21 = scalar_lea.hbm %s2168_s26, 128  ;;  %p1870_p0 = pneg %p2172_p11 }
  0x49   : > { %p1869_p12 = scmp.ne.s32.totalorder %s2168_s26, %s1868_s21  ;;  %s1873_s10 = scalar_lea.hbm %s2375_s0, 256 }
  0x4a   : > { %p1874_p13 = scmp.lt.u32.totalorder %s2168_s26, %s2375_s0  ;;  %p1875_p6 = scmp.lt.u32.totalorder %s1873_s10, %s1868_s21 }
  0x4b   : > { %p1871_p2 = pnand %p1870_p0, %p1869_p12  ;;  %p1877_p3 = scmp.lt.u32.totalorder %s1868_s21, %s2168_s26 }
  0x4c   : > { %p1876_p10 = por %p1875_p6, %p1874_p13 }
  0x4d   : > { %p1872_p1 = pneg %p1871_p2 }
  0x4e   : > { %p1878_p7 = por %p1877_p3, %p1876_p10 }
  0x50   : > { %p1879_p9 = pnand %p1878_p7, %p1872_p1 }
  0x52   : > { %1882 = shalt.err (!%p1879_p9)
}
  0x53   : > { %s1883_s24 = scalar_lea.vmem %s2170_s17, 128  ;;  %s1974_s18 = smov [#allocation2]  }
  0x54   : > { %p1884_p12 = scmp.ne.s32.totalorder %s2170_s17, %s1883_s24  ;;  %s1888_s25 = sshll.u32 %s1974_s18, 4  ;;  %s1889_s25 = int_to_ptr.vmem [resolvable:$false] %s1888_s25 }
  0x55   : > { %s1890_s14 = scalar_lea.vmem %s1889_s25, 256  ;;  %p1891_p4 = scmp.lt.s32.totalorder %s2170_s17, %s1889_s25 }
  0x56   : > { %p1886_p2 = pnand %p1884_p12, %p1870_p0  ;;  %p1892_p13 = scmp.lt.s32.totalorder %s1890_s14, %s1883_s24 }
  0x58   : > { %p1887_p5 = pneg %p1886_p2  ;;  %p1893_p6 = por %p1892_p13, %p1891_p4 }
  0x5a   : > { %p1894_p10 = pnand %p1893_p6, %p1887_p5 }
  0x5c   : > { %1897 = shalt.err (!%p1894_p10)
}
  0x5d   : > { %1733 = dma.hbm_to_vmem [thread:$0]  (!%p2172_p11), %s2168_s26, 128, %s2170_s17, %s286_s16  }
  0x5e   : > { %311 = sbr.rel (%p2075_p8) target bundleno = 3012 (0xbc4), region = 52  ;;  %s2204_s21 = sand.u32 (!%p2075_p8), 1, %s1960_s28  }
  0x5f   : > { %s1576_s10 = sshll.u32 (!%p2075_p8), %s2204_s21, 3  ;;  %s314_s15 = scalar_lea.sflag (!%p2075_p8), [#allocation3], %s2204_s21 }
  0x60   : > { %s317_s24 = scalar_lea.vmem (!%p2075_p8), [#allocation2], %s1576_s10  ;;  %p2394_p4 = scmp.ne.s32.totalorder (!%p2075_p8), %s2387_s11, 0 }
  0x65   : > { %1943 = dma.done.wait (%p2394_p4), %s314_s15, 128  }
  0x66   : > { %1945 = vsyncadd (%p2394_p4), %s314_s15, 4294967168  ;;  %p2395_p5 = scmp.eq.s32.totalorder %s2056_s9, 0 }
  0x68   : > { %1947 = dma.done.wait (%p2395_p5), [#allocation6], 1024   ;;  %p2396_p8 = pmov %p2395_p5 }
  0x69   : > { %v1975_v0 = vmov 0.0|0.0   ;;  %vm1976_vm0 = vmmov 0   ;;  %v1977_v1 = vmov 0.0   ;;  %v367_v2 = vld [vmem:[#allocation5] sm:$0xff]  ;;  %v368_v3 = vld [vmem:[#allocation5 + $0x8] sm:$0xff]  ;;  %v369_v4 = vld [vmem:[#allocation5 + $0x10] sm:$0xff]  ;;  %v460_v16 = vlaneseq }
  0x6a   : > { %1949 = vsyncadd (%p2396_p8), [#allocation6], 4294966272  ;;  %1705 = vmatprep.subr.bf16.mxu0 %v1975_v0  ;;  %1642 = vmatprep.mubr.msk.f32.mxu0 %vm1976_vm0, %v1977_v1  ;;  %v1706_v5 = vpack.c.bf16 %v368_v3, %v367_v2  ;;  %v370_v6 = vld [vmem:[#allocation5 + $0x18] sm:$0xff]  ;;  %vm385_vm1 = vcmask 261120   ;;  %v1580_v9 = vld [vmem:[%s2378_s3] ss:$0 sm:$0xff] }
  0x6b   : > { %1645 = vmatprep.subr.mxu1 %v1977_v1  ;;  %1647 = vmatprep.mubr.msk.f32.mxu1 %vm1976_vm0, %v1977_v1  ;;  %v1709_v7 = vpack.c.bf16 %v370_v6, %v369_v4  ;;  %v2223_v8 = vld [vmem:[%s317_s24] sm:$0xff]  ;;  %s1978_s26 = smov 120   ;;  %s1979_s17 = smov 96   ;;  %vm468_vm2 = vcmask 64512   ;;  %v461_v17 = vshrl.u32 %v460_v16, 7  ;;  %v373_v40 = vld [vmem:[#allocation7 + $0x8] sm:$0xff] }
  0x6c   : > { %1707 = vmatpush3.bf16.msra.mxu0 %v1706_v5  ;;  %s1980_s19 = smov 88   ;;  %p361_p11 = scmp.lt.s32.totalorder %s2056_s9, 1  ;;  %v372_v49 = vld [vmem:[#allocation7] sm:$0xff] }
  0x6d   : > { %1708 = vmatprep.subr.bf16.mxu0 %v1975_v0  ;;  %v462_v20 = vsub.s32 0, %v461_v17  ;;  %s1981_s15 = smov 56   ;;  %s1982_s24 = smov 64  }
  0x6e   : > { %s362_s16 = scalar_select %p361_p11, %s2056_s9, 1 }
  0x6f   : > { %s1983_s11 = smov 80   ;;  %s1984_s13 = smov 112  }
  0x70   : > { %1710 = vmatpush3.bf16.msra.mxu0 %v1709_v7  ;;  %s363_s14 = scalar_lea.vmem %s2376_s1, %s362_s16  ;;  %s1988_s16 = smov 40  }
  0x71   : > { %1655 = vmatprep.subr.mxu0 %v1977_v1  ;;  %v365_v18 = vld [vmem:[%s363_s14] sm:$0x1]  ;;  %s1457_s25 = scalar_lea.sflag [#allocation4], %s2204_s21  ;;  %p2397_p1 = scmp.ne.s32.totalorder %s2392_s22, 0 }
  0x72   : > { %v366_v19 = vmul.f32 -1e+15, %v365_v18 }
  0x73   : > { %1643 = vmatmul.mubr.msk.f32.vlgmr.msra.gmra.mrb[0].mxu0 %vm385_vm1, %v2223_v8 }
  0x74   : > { %1657 = vmatprep.mubr.msk.f32.mxu0 %vm1976_vm0, %v1977_v1  ;;  %v2254_v21 = vrot.slane %v366_v19, %v462_v20 }
 0x146   : > { %v455_v10 = vpop.f32.mrb[0].mxu0 }
 0x147   : > { %v2233_v11 = vadd.f32 %v1580_v9, %v455_v10  ;;  %v1644_v12 = vpop.f32.mrb[1].mxu0 }
 0x149   : > { %630 = vrot.lane.b32.xlu1 %v2233_v11, %s1978_s26  ;;  %466 = vrot.lane.b32.xlu0 %v2233_v11, %s1979_s17  ;;  %s1985_s26 = smov 72   ;;  %s1986_s17 = smov 104  }
 0x14d   : > { %632 = vrot.lane.b32.xlu0 %v2233_v11, %s1980_s19  ;;  %s1987_s19 = smov 48  }
 0x1bb   : > { %v467_v13 = vpop.permute.xlu0 %466  ;;  %v631_v15 = vpop.permute.xlu1 %630 }
 0x1bc   : > { %1646 = vmatpush3.xpose.msk.msra.mxu1 %vm468_vm2, %v467_v13 }
 0x1bd   : > { %1650 = vmatprep.subr.mxu1 %v1977_v1 }
 0x1bf   : > { %1648 = vmatmul.mubr.msk.f32.vlgmr.msra.gmra.mrb[0].mxu1 %vm468_vm2, %v2233_v11  ;;  %v633_v14 = vpop.permute.xlu0 %632 }
 0x1c0   : > { %1656 = vmatpush3.xpose.msk.msra.mxu0 %vm468_vm2, %v633_v14  ;;  %1652 = vmatprep.mubr.msk.f32.mxu1 %vm1976_vm0, %v1977_v1 }
 0x1c1   : > { %1665 = vmatprep.subr.mxu0 %v1977_v1 }
 0x1c3   : > { %1658 = vmatmul.mubr.msk.f32.vlgmr.msra.gmra.mrb[2].mxu0 %vm468_vm2, %v631_v15  ;;  %v374_v15 = vld [vmem:[#allocation7 + $0x10] sm:$0xff] }
 0x1c4   : > { %1667 = vmatprep.mubr.msk.f32.mxu0 %vm1976_vm0, %v1977_v1  ;;  %1666 = vmatpush3.msra.mxu0 %v373_v40 }
 0x1c5   : > { %1675 = vmatprep.subr.mxu0 %v1977_v1 }
 0x292   : > { %v539_v22 = vpop.f32.mrb[0].mxu1 }
 0x293   : > { %v540_v23 = vadd.f32 %v539_v22, %v2254_v21  ;;  %v1649_v24 = vpop.f32.mrb[1].mxu1 }
 0x295   : > { %v543_v25 = vsel %vm468_vm2, %v540_v23, -inf }
 0x296   : > { %544 = vmax.xlane.f32.xlu1 %v543_v25  ;;  %v704_v26 = vpop.f32.mrb[2].mxu0 }
 0x297   : > { %v705_v27 = vadd.f32 %v704_v26, %v2254_v21  ;;  %v1659_v28 = vpop.f32.mrb[3].mxu0 }
 0x299   : > { %v708_v29 = vsel %vm468_vm2, %v705_v27, -inf }
 0x29a   : > { %709 = vmax.xlane.f32.xlu0 %v708_v29 }
 0x323   : > { %v545_v30 = vpop.xlane.xlu1 %544 }
 0x324   : > { %v546_v31 = vsub.f32 %v540_v23, %v545_v30 }
 0x326   : > { %v547_v32 = vmul.f32 1.442695, %v546_v31 }
 0x327   : > { %v710_v33 = vpop.xlane.xlu0 %709 }
 0x328   : > { %1794 = vpow2.f32 %v547_v32  ;;  %v711_v34 = vsub.f32 %v705_v27, %v710_v33 }
 0x32a   : > { %v712_v35 = vmul.f32 1.442695, %v711_v34 }
 0x32c   : > { %1796 = vpow2.f32 %v712_v35  ;;  %v1598_v35 = vld [vmem:[%s2380_s5] ss:$0 sm:$0xff] }
 0x332   : > { %v1795_v36 = vpop.eup %1794 }
 0x333   : > { %v549_v37 = vsel %vm468_vm2, %v1795_v36, 0.0 }
 0x334   : > { %550 = vadd.xlane.f32.xlu0 %v549_v37 }
 0x336   : > { %v1797_v38 = vpop.eup %1796 }
 0x337   : > { %v714_v39 = vsel %vm468_vm2, %v1797_v38, 0.0 }
 0x338   : > { %715 = vadd.xlane.f32.xlu1 %v714_v39 }
 0x349   : > { %719 = vrot.lane.b32.xlu1 %v2233_v11, %s1981_s15 }
 0x34a   : > { %554 = vrot.lane.b32.xlu0 %v2233_v11, %s1982_s24 }
 0x34d   : > { %943 = vrot.lane.b32.xlu1 %v2233_v11, %s1983_s11 }
 0x34e   : > { %941 = vrot.lane.b32.xlu0 %v2233_v11, %s1984_s13  ;;  %s1602_s13 = sshll.u32 %s2056_s9, 7  ;;  %s1989_s9 = smov [#allocation8]  }
 0x34f   : > { %s2330_s18 = scalar_lea.hbm %s2383_s8, %s1602_s13 }
 0x3c1   : > { %v551_v41 = vpop.xlane.xlu0 %550 }
 0x3c2   : > { %1798 = vrcp.f32 %v551_v41 }
 0x3c5   : > { %v716_v42 = vpop.xlane.xlu1 %715  ;;  %v555_v43 = vpop.permute.xlu0 %554 }
 0x3c6   : > { %1800 = vrcp.f32 %v716_v42  ;;  %1651 = vmatpush3.msra.mxu1 %v555_v43 }
 0x3c7   : > { %1660 = vmatprep.subr.mxu1 %v1977_v1 }
 0x3c9   : > { %v720_v46 = vpop.permute.xlu1 %719  ;;  %v942_v55 = vpop.permute.xlu0 %941 }
 0x3cc   : > { %v1799_v44 = vpop.eup %1798 }
 0x3cd   : > { %v553_v45 = vmul.f32 %v1799_v44, %v1795_v36  ;;  %v944_v53 = vpop.permute.xlu1 %943 }
 0x3cf   : > { %1653 = vmatmul.mubr.msk.f32.vlgmr.msra.gmra.mrb[2].mxu1 %vm468_vm2, %v553_v45 }
 0x3d0   : > { %v1801_v47 = vpop.eup %1800  ;;  %1661 = vmatpush3.msra.mxu1 %v720_v46  ;;  %1662 = vmatprep.mubr.msk.f32.mxu1 %vm1976_vm0, %v1977_v1 }
 0x3d1   : > { %v718_v48 = vmul.f32 %v1801_v47, %v1797_v38  ;;  %1670 = vmatprep.subr.mxu1 %v1977_v1 }
 0x3d3   : > { %1663 = vmatmul.mubr.msk.f32.vlgmr.msra.gmra.mrb[4].mxu1 %vm468_vm2, %v718_v48 }
 0x3d4   : > { %1672 = vmatprep.mubr.msk.f32.mxu1 %vm1976_vm0, %v1977_v1  ;;  %1671 = vmatpush3.msra.mxu1 %v372_v49 }
 0x3d5   : > { %1680 = vmatprep.subr.mxu1 %v1977_v1 }
 0x4a2   : > { %v626_v50 = vpop.f32.mrb[2].mxu1 }
 0x4a3   : > { %v1654_v51 = vpop.f32.mrb[3].mxu1  ;;  %1673 = vmatmul.mubr.msk.f32.vlgmr.msra.gmra.mrb[6].mxu1 %vm468_vm2, %v626_v50 }
 0x4a4   : > { %1682 = vmatprep.mubr.msk.f32.mxu1 %vm1976_vm0, %v1977_v1 }
 0x4a6   : > { %v791_v52 = vpop.f32.mrb[4].mxu1 }
 0x4a7   : > { %v1664_v54 = vpop.f32.mrb[5].mxu1  ;;  %1668 = vmatmul.mubr.msk.f32.vlgmr.msra.gmra.mrb[4].mxu0 %vm468_vm2, %v791_v52  ;;  %v1600_v52 = vld [vmem:[%s2382_s7] ss:$0 sm:$0xff] }
 0x4a8   : > { %1676 = vmatpush3.xpose.msk.msra.mxu0 %vm468_vm2, %v944_v53  ;;  %1677 = vmatprep.mubr.msk.f32.mxu0 %vm1976_vm0, %v1977_v1 }
 0x4a9   : > { %1685 = vmatprep.subr.mxu0 %v1977_v1 }
 0x4ab   : > { %1678 = vmatmul.mubr.msk.f32.vlgmr.msra.gmra.mrb[6].mxu0 %vm468_vm2, %v942_v55 }
 0x4ac   : > { %1687 = vmatprep.mubr.msk.f32.mxu0 %vm1976_vm0, %v1977_v1  ;;  %1686 = vmatpush3.msra.mxu0 %v374_v15 }
 0x4ad   : > { %1695 = vmatprep.subr.mxu0 %v1977_v1 }
 0x576   : > { %v937_v56 = vpop.f32.mrb[6].mxu1 }
 0x577   : > { %v1674_v57 = vpop.f32.mrb[7].mxu1 }
 0x57a   : > { %v864_v58 = vpop.f32.mrb[4].mxu0 }
 0x57b   : > { %v938_v59 = vadd.f32 %v937_v56, %v864_v58  ;;  %v1669_v60 = vpop.f32.mrb[5].mxu0 }
 0x57e   : > { %v1015_v61 = vpop.f32.mrb[6].mxu0 }
 0x57f   : > { %v1016_v62 = vadd.f32 %v1015_v61, %v2254_v21  ;;  %v1679_v63 = vpop.f32.mrb[7].mxu0 }
 0x581   : > { %v1019_v0 = vsel %vm468_vm2, %v1016_v62, -inf }
 0x582   : > { %1020 = vmax.xlane.f32.xlu1 %v1019_v0 }
 0x593   : > { %1182 = vrot.lane.b32.xlu1 %v2233_v11, %s1985_s26  ;;  %s360_s26 = scalar_lea.vmem [#allocation8], %s1576_s10  ;;  %s1902_s10 = sshll.u32 %s1989_s9, 4  ;;  %s1903_s10 = int_to_ptr.vmem [resolvable:$false] %s1902_s10 }
 0x594   : > { %s1904_s15 = scalar_lea.vmem %s1903_s10, 256 }
 0x597   : > { %1180 = vrot.lane.b32.xlu1 %v2233_v11, %s1986_s17  ;;  %s1470_s17 = sshll.u32 %s360_s26, 4  ;;  %s2332_s17 = int_to_ptr.vmem [resolvable:$true] %s1470_s17 }
 0x598   : > { %s1898_s14 = scalar_lea.vmem %s2332_s17, 128  ;;  %p1905_p9 = scmp.lt.s32.totalorder %s2332_s17, %s1903_s10 }
 0x599   : > { %p1899_p0 = scmp.ne.s32.totalorder %s2332_s17, %s1898_s14  ;;  %p1906_p12 = scmp.lt.s32.totalorder %s1904_s15, %s1898_s14 }
 0x59b   : > { %p1900_p3 = pnand %p1899_p0, %p2397_p1  ;;  %p1907_p2 = por %p1906_p12, %p1905_p9 }
 0x59d   : > { %p1901_p7 = pneg %p1900_p3 }
 0x59f   : > { %p1908_p13 = pnand %p1907_p2, %p1901_p7 }
 0x60f   : > { %v1021_v2 = vpop.xlane.xlu1 %1020 }
 0x610   : > { %v1022_v3 = vsub.f32 %v1016_v62, %v1021_v2 }
 0x612   : > { %v1023_v4 = vmul.f32 1.442695, %v1022_v3 }
 0x613   : > { %v1183_v12 = vpop.permute.xlu1 %1182 }
 0x614   : > { %1802 = vpow2.f32 %v1023_v4 }
 0x617   : > { %v1181_v14 = vpop.permute.xlu1 %1180 }
 0x61e   : > { %v1803_v5 = vpop.eup %1802 }
 0x61f   : > { %v1025_v6 = vsel %vm468_vm2, %v1803_v5, 0.0 }
 0x620   : > { %1026 = vadd.xlane.f32.xlu0 %v1025_v6 }
 0x636   : > { %1030 = vrot.lane.b32.xlu0 %v2233_v11, %s1987_s19 }
 0x6ad   : > { %v1027_v7 = vpop.xlane.xlu0 %1026 }
 0x6ae   : > { %1804 = vrcp.f32 %v1027_v7 }
 0x6b1   : > { %v1031_v9 = vpop.permute.xlu0 %1030 }
 0x6b2   : > { %1681 = vmatpush3.msra.mxu1 %v1031_v9 }
 0x6b3   : > { %1690 = vmatprep.subr.mxu1 %v1977_v1 }
 0x6b8   : > { %v1805_v10 = vpop.eup %1804 }
 0x6b9   : > { %v1029_v13 = vmul.f32 %v1805_v10, %v1803_v5 }
 0x6bb   : > { %1683 = vmatmul.mubr.msk.f32.vlgmr.msra.gmra.mrb[8].mxu1 %vm468_vm2, %v1029_v13 }
 0x6bc   : > { %1691 = vmatpush3.xpose.msk.msra.mxu1 %vm468_vm2, %v1183_v12  ;;  %1692 = vmatprep.mubr.msk.f32.mxu1 %vm1976_vm0, %v1977_v1 }
 0x6bd   : > { %1700 = vmatprep.subr.mxu1 %v1977_v1 }
 0x6bf   : > { %1693 = vmatmul.mubr.msk.f32.vlgmr.msra.gmra.mrb[10].mxu1 %vm468_vm2, %v1181_v14 }
 0x6c0   : > { %1702 = vmatprep.mubr.msk.f32.mxu1 %vm1976_vm0, %v1977_v1 }
 0x78e   : > { %v1102_v16 = vpop.f32.mrb[8].mxu1 }
 0x78f   : > { %v1684_v17 = vpop.f32.mrb[9].mxu1  ;;  %1688 = vmatmul.mubr.msk.f32.vlgmr.msra.gmra.mrb[8].mxu0 %vm468_vm2, %v1102_v16 }
 0x790   : > { %1697 = vmatprep.mubr.msk.f32.mxu0 %vm1976_vm0, %v1977_v1  ;;  %v375_v1 = vld [vmem:[#allocation7 + $0x18] sm:$0xff] }
 0x791   : > { %1701 = vmatpush3.msra.mxu1 %v375_v1 }
 0x792   : > { %v1254_v18 = vpop.f32.mrb[10].mxu1 }
 0x793   : > { %v1255_v19 = vadd.f32 %v1254_v18, %v2254_v21  ;;  %v1694_v20 = vpop.f32.mrb[11].mxu1 }
 0x795   : > { %v1258_v22 = vsel %vm468_vm2, %v1255_v19, -inf }
 0x796   : > { %1259 = vmax.xlane.f32.xlu0 %v1258_v22 }
 0x7ac   : > { %1269 = vrot.lane.b32.xlu0 %v2233_v11, %s1988_s16 }
 0x823   : > { %v1260_v23 = vpop.xlane.xlu0 %1259 }
 0x824   : > { %v1261_v24 = vsub.f32 %v1255_v19, %v1260_v23 }
 0x826   : > { %v1262_v25 = vmul.f32 1.442695, %v1261_v24 }
 0x827   : > { %v1270_v26 = vpop.permute.xlu0 %1269 }
 0x828   : > { %1806 = vpow2.f32 %v1262_v25  ;;  %1696 = vmatpush3.msra.mxu0 %v1270_v26 }
 0x832   : > { %v1807_v27 = vpop.eup %1806 }
 0x833   : > { %v1264_v28 = vsel %vm468_vm2, %v1807_v27, 0.0 }
 0x834   : > { %1265 = vadd.xlane.f32.xlu1 %v1264_v28 }
 0x862   : > { %v1175_v21 = vpop.f32.mrb[8].mxu0 }
 0x863   : > { %v1179_v29 = vadd.f32 %v1175_v21, %v938_v59  ;;  %v1689_v30 = vpop.f32.mrb[9].mxu0 }
 0x8c1   : > { %v1266_v31 = vpop.xlane.xlu1 %1265 }
 0x8c2   : > { %1808 = vrcp.f32 %v1266_v31 }
 0x8cc   : > { %v1809_v32 = vpop.eup %1808 }
 0x8cd   : > { %v1268_v33 = vmul.f32 %v1809_v32, %v1807_v27 }
 0x8cf   : > { %1698 = vmatmul.mubr.msk.f32.vlgmr.msra.gmra.mrb[10].mxu0 %vm468_vm2, %v1268_v33 }
 0x9a2   : > { %v1341_v11 = vpop.f32.mrb[10].mxu0 }
 0x9a3   : > { %v1699_v34 = vpop.f32.mrb[11].mxu0  ;;  %1703 = vmatmul.mubr.msk.f32.vlgmr.msra.gmra.mrb[12].mxu1 %vm468_vm2, %v1341_v11 }
 0xa76   : > { %v1414_v36 = vpop.f32.mrb[12].mxu1 }
 0xa77   : > { %v1418_v37 = vadd.f32 %v1414_v36, %v1179_v29  ;;  %v1704_v38 = vpop.f32.mrb[13].mxu1 }
 0xa79   : > { %v1425_v39 = vadd.f32 %v1598_v35, %v1418_v37 }
 0xa7b   : > { %v1426_v40 = vadd.f32 %v1425_v39, %v2223_v8  ;;  %v1599_v8 = vld [vmem:[%s2381_s6] ss:$0 sm:$0xff] }
 0xa7d   : > { %v1427_v41 = vsel %vm385_vm1, %v1426_v40, 0.0 }
 0xa7e   : > { %1428 = vadd.xlane.f32.xlu1 %v1427_v41 }
 0xb0b   : > { %v1429_v42 = vpop.xlane.xlu1 %1428 }
 0xb0c   : > { %v1431_v43 = vmul.f32 0.03125, %v1429_v42 }
 0xb0e   : > { %v1432_v44 = vsub.f32 %v1426_v40, %v1431_v43 }
 0xb10   : > { %v1433_v45 = vmul.f32 %v1432_v44, %v1432_v44 }
 0xb12   : > { %v1434_v46 = vsel %vm385_vm1, %v1433_v45, 0.0 }
 0xb13   : > { %1435 = vadd.xlane.f32.xlu1 %v1434_v46 }
 0xba0   : > { %v1436_v47 = vpop.xlane.xlu1 %1435 }
 0xba1   : > { %v1437_v48 = vmul.f32 0.03125, %v1436_v47 }
 0xba3   : > { %v1438_v49 = vadd.f32 1e-05, %v1437_v48 }
 0xba5   : > { %1810 = vrsqrt.f32 %v1438_v49 }
 0xbaf   : > { %v1811_v50 = vpop.eup %1810 }
 0xbb0   : > { %v1440_v51 = vmul.f32 %v1811_v50, %v1432_v44 }
 0xbb2   : > { %v1447_v53 = vmul.f32 %v1599_v8, %v1440_v51 }
 0xbb4   : > { %v1454_v54 = vadd.f32 %v1600_v52, %v1447_v53 }
 0xbb6   : > { %1455 = vst.msk [vmem:[%s360_s26] sm:$0xff] %vm385_vm1, %v1454_v54 }
 0xbb7   : > { %1911 = shalt.err (!%p1908_p13)
}
 0xbb8   : > { %s1912_s21 = scalar_lea.hbm %s2330_s18, 128  ;;  %s1916_s13 = scalar_lea.hbm %s2383_s8, 256 }
 0xbb9   : > { %p1913_p6 = scmp.ne.s32.totalorder %s2330_s18, %s1912_s21  ;;  %p1917_p5 = scmp.lt.u32.totalorder %s2330_s18, %s2383_s8 }
 0xbba   : > { %p1918_p8 = scmp.lt.u32.totalorder %s1916_s13, %s1912_s21  ;;  %p1920_p0 = scmp.lt.u32.totalorder %s1912_s21, %s2330_s18 }
 0xbbb   : > { %p1914_p10 = pnand %p1913_p6, %p2397_p1 }
 0xbbc   : > { %p1919_p11 = por %p1918_p8, %p1917_p5 }
 0xbbd   : > { %p1915_p4 = pneg %p1914_p10 }
 0xbbe   : > { %p1921_p3 = por %p1920_p0, %p1919_p11 }
 0xbc0   : > { %p1922_p7 = pnand %p1921_p3, %p1915_p4 }
 0xbc2   : > { %1925 = shalt.err (!%p1922_p7)
}
 0xbc3   : > { %1721 = dma.vmem_to_hbm [thread:$0]  (%p2397_p1), %s2332_s17, 128, %s2330_s18, %s1457_s25  }
 0xbc4 PF: > { %s1482_s16 = sand.u32 1, %s1956_s27   ;;  %p2398_p9 = scmp.ne.s32.totalorder %s2388_s12, 0 }
 0xbc5   : > { %p2399_p12 = scmp.ge.s32.totalorder %s1968_s30, 2  ;;  %s1483_s14 = scalar_lea.sflag [#allocation4], %s1482_s16 }
 0xbc7   : > { %p1735_p2 = pnand %p2399_p12, %p2398_p9 }
 0xbc9   : > { %1951 = dma.done.wait (!%p1735_p2), %s1483_s14, 128  }
 0xbca   : > { %1953 = vsyncadd (!%p1735_p2), %s1483_s14, 4294967168  ;;  %p22_p13 = scmp.ge.s32.totalorder %s2145_s20, 4   ;;  %s2400_s27 = smov %s1960_s28 }
 0xbcb   : > { %s2401_s28 = smov %s1964_s29  ;;  %s2402_s29 = smov %s2161_s23 }
 0xbcc   : > { %s2403_s30 = smov %s2145_s20  ;;  %24 = sbr.rel (!%p22_p13) target bundleno = 6 (0x6), region = 108 }
 0xbd3   :  { %1488 = vsyncpa [#allocation3], 1 }
 0xbd4   :  { %1490 = vsyncpa [#allocation3 + $0x1], 1 }
 0xbd5   :  { %1491 = vsyncpa [#allocation6], 1 }
 0xbd6   :  { %1492 = vsyncpa [#allocation4], 1 }
 0xbd7   :  { %1494 = vsyncpa [#allocation4 + $0x1], 1 }

</bundles_post_ra>
